<compile_context>
chip_gen: v5e
topology: v5e:2x2
jax: 0.10.0
libtpu: 0.0.40
codegen_flags: <defaults>
</compile_context>

<pallas_src>
import jax
import jax.numpy as jnp
from jax.experimental import pallas as pl


# ----------------------------------------------------------------------------
# Fused kernel: all RNN layers + FC head in one grid step, everything in VMEM.
# ----------------------------------------------------------------------------
def make_fused_kernel(num_layers, T, B, H, C):
    def kernel(*refs):
        # refs layout: x, (w_ih_t, w_hh_t, b) * num_layers, fc_w3, fc_b, out
        x_ref = refs[0]                          # (T, B, D_in)
        fc_w_ref = refs[1 + 3 * num_layers]      # (T, H, C)
        fc_b_ref = refs[2 + 3 * num_layers]      # (1, C)
        out_ref = refs[3 + 3 * num_layers]       # (B, C)

        # Per-timestep inputs of the current layer.  x is sequence-major so
        # x_ref[t] is a clean leading-dim load.
        seq_t = [x_ref[t] for t in range(T)]     # each (B, D_in), fp32

        # FC accumulator starts from the bias (hoisted broadcast, fp32).
        acc = jnp.broadcast_to(fc_b_ref[...], (B, C)).astype(jnp.float32)

        for l in range(num_layers):
            w_ih = refs[1 + 3 * l][...]          # (D_in, H)
            w_hh = refs[2 + 3 * l][...]          # (H, H)
            # Hoist the bias broadcast out of the time loop (no CSE in JAX).
            b = jnp.broadcast_to(refs[3 + 3 * l][...], (B, H))  # (B, H)
            last = l == num_layers - 1

            # Input projections: independent across t -> off the serial chain.
            proj = [
                jnp.dot(seq_t[t], w_ih, preferred_element_type=jnp.float32) + b
                for t in range(T)
            ]

            # Serial recurrence: one small matmul + tanh per step.  For the
            # last layer the FC partial product is folded into the same loop
            # (it only depends on h_t, so it never extends the serial chain).
            outs = []
            h = jnp.tanh(proj[0])                # h_0 = 0 folded in
            for t in range(T):
                if t > 0:
                    h = jnp.tanh(
                        proj[t]
                        + jnp.dot(h, w_hh, preferred_element_type=jnp.float32)
                    )
                if last:
                    acc = acc + jnp.dot(
                        h, fc_w_ref[t], preferred_element_type=jnp.float32
                    )
                else:
                    outs.append(h)
            if not last:
                seq_t = outs                     # feed next layer

        out_ref[...] = acc.astype(out_ref.dtype)

    return kernel


# ----------------------------------------------------------------------------
# Wrapper: builds specs, calls the fused kernel once.
# ----------------------------------------------------------------------------
@jax.jit
def rnn_model_forward(x, params):
    """x: (B, T, input_size) — batch_first, matching the PyTorch module."""
    B, T, _ = x.shape
    layers = params["layers"]
    num_layers = len(layers)
    H = layers[0][1].shape[0]
    C = params["fc_b"].shape[1]

    # Tiny layout ops outside the kernel (free in XLA):
    #   * time-major input so the kernel slices timesteps on the leading dim,
    #   * FC weight reshaped to (T, H, C) so per-timestep slabs are leading-dim
    #     ref loads instead of in-kernel value slices.
    seq = jnp.transpose(x, (1, 0, 2))            # (T, B, D)
    fc_w3 = params["fc_w_t"].reshape(T, H, C)    # (T, H, C)

    operands = [seq]
    in_specs = [pl.BlockSpec(seq.shape, lambda: (0, 0, 0))]
    for (w_ih_t, w_hh_t, b) in layers:
        operands += [w_ih_t, w_hh_t, b]
        in_specs += [
            pl.BlockSpec(w_ih_t.shape, lambda: (0, 0)),
            pl.BlockSpec(w_hh_t.shape, lambda: (0, 0)),
            pl.BlockSpec(b.shape, lambda: (0, 0)),
        ]
    operands += [fc_w3, params["fc_b"]]
    in_specs += [
        pl.BlockSpec(fc_w3.shape, lambda: (0, 0, 0)),
        pl.BlockSpec(params["fc_b"].shape, lambda: (0, 0)),
    ]

    kernel = make_fused_kernel(num_layers, T, B, H, C)
    return pl.pallas_call(
        kernel,
        out_shape=jax.ShapeDtypeStruct((B, C), x.dtype),
        in_specs=in_specs,
        out_specs=pl.BlockSpec((B, C), lambda: (0, 0)),
    )(*operands)


# ----------------------------------------------------------------------------
# Deterministic parameter init (mimics PyTorch U(-1/sqrt(H), 1/sqrt(H)) scale)
# ----------------------------------------------------------------------------
def init_params(key, input_size, hidden_size, sequence_length, num_layers, num_classes):
    params = {"layers": []}
    k = 1.0 / jnp.sqrt(hidden_size)
    for layer in range(num_layers):
        d_in = input_size if layer == 0 else hidden_size
        key, k1, k2, k3, k4 = jax.random.split(key, 5)
        w_ih_t = jax.random.uniform(k1, (d_in, hidden_size), jnp.float32, -k, k)
        w_hh_t = jax.random.uniform(k2, (hidden_size, hidden_size), jnp.float32, -k, k)
        b_ih = jax.random.uniform(k3, (hidden_size,), jnp.float32, -k, k)
        b_hh = jax.random.uniform(k4, (hidden_size,), jnp.float32, -k, k)
        # The two biases always appear summed -> pre-combine once.
        params["layers"].append((w_ih_t, w_hh_t, (b_ih + b_hh).reshape(1, hidden_size)))
    F = hidden_size * sequence_length
    kf = 1.0 / jnp.sqrt(F)
    key, k1, k2 = jax.random.split(key, 3)
    params["fc_w_t"] = jax.random.uniform(k1, (F, num_classes), jnp.float32, -kf, kf)
    params["fc_b"] = jax.random.uniform(k2, (1, num_classes), jnp.float32, -kf, kf)
    return params


# Pure-JAX reference (same math, no Pallas) for a correctness cross-check.
def reference_forward(x, params):
    B, T, _ = x.shape
    seq = x
    for (w_ih_t, w_hh_t, b) in params["layers"]:
        H = w_hh_t.shape[0]
        h = jnp.zeros((B, H), jnp.float32)
        outs = []
        for t in range(T):
            h = jnp.tanh(seq[:, t, :] @ w_ih_t + h @ w_hh_t + b)
            outs.append(h)
        seq = jnp.stack(outs, axis=1)
    flat = seq.reshape(B, -1)
    return flat @ params["fc_w_t"] + params["fc_b"]


if __name__ == "__main__":
    # Small shapes consistent with the module's forward.
    batch = 2
    sequence_length = 8
    input_size = 16
    hidden_size = 32
    num_layers = 2
    num_classes = 10

    key = jax.random.PRNGKey(0)
    key, xk = jax.random.split(key)
    x = jax.random.normal(xk, (batch, sequence_length, input_size), jnp.float32)

    params = init_params(key, input_size, hidden_size, sequence_length,
                         num_layers, num_classes)

    out = rnn_model_forward(x, params)
    out = jax.block_until_ready(out)

    ref = reference_forward(x, params)
    assert out.shape == (batch, num_classes)
    assert jnp.allclose(out, ref, atol=1e-4, rtol=1e-4), "mismatch vs reference"

    print("KERNEL_OK")
</pallas_src>

<mosaic_0001>
module attributes {stable_mosaic.version = 11 : i64} {
  func.func @kernel(%arg0: memref<8x2x16xf32, #tpu.memory_space<vmem>>, %arg1: memref<16x32xf32, #tpu.memory_space<vmem>>, %arg2: memref<32x32xf32, #tpu.memory_space<vmem>>, %arg3: memref<1x32xf32, #tpu.memory_space<vmem>>, %arg4: memref<32x32xf32, #tpu.memory_space<vmem>>, %arg5: memref<32x32xf32, #tpu.memory_space<vmem>>, %arg6: memref<1x32xf32, #tpu.memory_space<vmem>>, %arg7: memref<8x32x10xf32, #tpu.memory_space<vmem>>, %arg8: memref<1x10xf32, #tpu.memory_space<vmem>>, %arg9: memref<2x10xf32, #tpu.memory_space<vmem>>) attributes {dimension_semantics = [], scalar_prefetch = 0 : i64, scratch_operands = 0 : i64, tpu.core_type = #tpu.core_type<tc>} {
    %c0 = arith.constant 0 : index
    %c0_0 = arith.constant 0 : index
    %c0_1 = arith.constant 0 : index
    %0 = vector.load %arg0[%c0, %c0_0, %c0_1] : memref<8x2x16xf32, #tpu.memory_space<vmem>>, vector<1x2x16xf32>
    %1 = vector.shape_cast %0 : vector<1x2x16xf32> to vector<2x16xf32>
    %c1 = arith.constant 1 : index
    %c0_2 = arith.constant 0 : index
    %c0_3 = arith.constant 0 : index
    %2 = vector.load %arg0[%c1, %c0_2, %c0_3] : memref<8x2x16xf32, #tpu.memory_space<vmem>>, vector<1x2x16xf32>
    %3 = vector.shape_cast %2 : vector<1x2x16xf32> to vector<2x16xf32>
    %c2 = arith.constant 2 : index
    %c0_4 = arith.constant 0 : index
    %c0_5 = arith.constant 0 : index
    %4 = vector.load %arg0[%c2, %c0_4, %c0_5] : memref<8x2x16xf32, #tpu.memory_space<vmem>>, vector<1x2x16xf32>
    %5 = vector.shape_cast %4 : vector<1x2x16xf32> to vector<2x16xf32>
    %c3 = arith.constant 3 : index
    %c0_6 = arith.constant 0 : index
    %c0_7 = arith.constant 0 : index
    %6 = vector.load %arg0[%c3, %c0_6, %c0_7] : memref<8x2x16xf32, #tpu.memory_space<vmem>>, vector<1x2x16xf32>
    %7 = vector.shape_cast %6 : vector<1x2x16xf32> to vector<2x16xf32>
    %c4 = arith.constant 4 : index
    %c0_8 = arith.constant 0 : index
    %c0_9 = arith.constant 0 : index
    %8 = vector.load %arg0[%c4, %c0_8, %c0_9] : memref<8x2x16xf32, #tpu.memory_space<vmem>>, vector<1x2x16xf32>
    %9 = vector.shape_cast %8 : vector<1x2x16xf32> to vector<2x16xf32>
    %c5 = arith.constant 5 : index
    %c0_10 = arith.constant 0 : index
    %c0_11 = arith.constant 0 : index
    %10 = vector.load %arg0[%c5, %c0_10, %c0_11] : memref<8x2x16xf32, #tpu.memory_space<vmem>>, vector<1x2x16xf32>
    %11 = vector.shape_cast %10 : vector<1x2x16xf32> to vector<2x16xf32>
    %c6 = arith.constant 6 : index
    %c0_12 = arith.constant 0 : index
    %c0_13 = arith.constant 0 : index
    %12 = vector.load %arg0[%c6, %c0_12, %c0_13] : memref<8x2x16xf32, #tpu.memory_space<vmem>>, vector<1x2x16xf32>
    %13 = vector.shape_cast %12 : vector<1x2x16xf32> to vector<2x16xf32>
    %c7 = arith.constant 7 : index
    %c0_14 = arith.constant 0 : index
    %c0_15 = arith.constant 0 : index
    %14 = vector.load %arg0[%c7, %c0_14, %c0_15] : memref<8x2x16xf32, #tpu.memory_space<vmem>>, vector<1x2x16xf32>
    %15 = vector.shape_cast %14 : vector<1x2x16xf32> to vector<2x16xf32>
    %c0_16 = arith.constant 0 : index
    %c0_17 = arith.constant 0 : index
    %16 = vector.load %arg8[%c0_16, %c0_17] : memref<1x10xf32, #tpu.memory_space<vmem>>, vector<1x10xf32>
    %17 = vector.shape_cast %16 : vector<1x10xf32> to vector<1x10xf32>
    %18 = vector.broadcast %17 : vector<1x10xf32> to vector<2x10xf32>
    %c0_18 = arith.constant 0 : index
    %c0_19 = arith.constant 0 : index
    %19 = vector.load %arg1[%c0_18, %c0_19] : memref<16x32xf32, #tpu.memory_space<vmem>>, vector<16x32xf32>
    %c0_20 = arith.constant 0 : index
    %c0_21 = arith.constant 0 : index
    %20 = vector.load %arg2[%c0_20, %c0_21] : memref<32x32xf32, #tpu.memory_space<vmem>>, vector<32x32xf32>
    %c0_22 = arith.constant 0 : index
    %c0_23 = arith.constant 0 : index
    %21 = vector.load %arg3[%c0_22, %c0_23] : memref<1x32xf32, #tpu.memory_space<vmem>>, vector<1x32xf32>
    %22 = vector.shape_cast %21 : vector<1x32xf32> to vector<1x32xf32>
    %23 = vector.broadcast %22 : vector<1x32xf32> to vector<2x32xf32>
    %cst = arith.constant dense<0.000000e+00> : vector<2x32xf32>
    %24 = tpu.matmul %1, %19, %cst {dimension_numbers = #tpu.dot_dimension_numbers<[1], [0], [0], [1], [0, 0, 1, 1], [], []>} : vector<2x16xf32>, vector<16x32xf32>, vector<2x32xf32> -> vector<2x32xf32>
    %25 = arith.addf %24, %23 : vector<2x32xf32>
    %cst_24 = arith.constant dense<0.000000e+00> : vector<2x32xf32>
    %26 = tpu.matmul %3, %19, %cst_24 {dimension_numbers = #tpu.dot_dimension_numbers<[1], [0], [0], [1], [0, 0, 1, 1], [], []>} : vector<2x16xf32>, vector<16x32xf32>, vector<2x32xf32> -> vector<2x32xf32>
    %27 = arith.addf %26, %23 : vector<2x32xf32>
    %cst_25 = arith.constant dense<0.000000e+00> : vector<2x32xf32>
    %28 = tpu.matmul %5, %19, %cst_25 {dimension_numbers = #tpu.dot_dimension_numbers<[1], [0], [0], [1], [0, 0, 1, 1], [], []>} : vector<2x16xf32>, vector<16x32xf32>, vector<2x32xf32> -> vector<2x32xf32>
    %29 = arith.addf %28, %23 : vector<2x32xf32>
    %cst_26 = arith.constant dense<0.000000e+00> : vector<2x32xf32>
    %30 = tpu.matmul %7, %19, %cst_26 {dimension_numbers = #tpu.dot_dimension_numbers<[1], [0], [0], [1], [0, 0, 1, 1], [], []>} : vector<2x16xf32>, vector<16x32xf32>, vector<2x32xf32> -> vector<2x32xf32>
    %31 = arith.addf %30, %23 : vector<2x32xf32>
    %cst_27 = arith.constant dense<0.000000e+00> : vector<2x32xf32>
    %32 = tpu.matmul %9, %19, %cst_27 {dimension_numbers = #tpu.dot_dimension_numbers<[1], [0], [0], [1], [0, 0, 1, 1], [], []>} : vector<2x16xf32>, vector<16x32xf32>, vector<2x32xf32> -> vector<2x32xf32>
    %33 = arith.addf %32, %23 : vector<2x32xf32>
    %cst_28 = arith.constant dense<0.000000e+00> : vector<2x32xf32>
    %34 = tpu.matmul %11, %19, %cst_28 {dimension_numbers = #tpu.dot_dimension_numbers<[1], [0], [0], [1], [0, 0, 1, 1], [], []>} : vector<2x16xf32>, vector<16x32xf32>, vector<2x32xf32> -> vector<2x32xf32>
    %35 = arith.addf %34, %23 : vector<2x32xf32>
    %cst_29 = arith.constant dense<0.000000e+00> : vector<2x32xf32>
    %36 = tpu.matmul %13, %19, %cst_29 {dimension_numbers = #tpu.dot_dimension_numbers<[1], [0], [0], [1], [0, 0, 1, 1], [], []>} : vector<2x16xf32>, vector<16x32xf32>, vector<2x32xf32> -> vector<2x32xf32>
    %37 = arith.addf %36, %23 : vector<2x32xf32>
    %cst_30 = arith.constant dense<0.000000e+00> : vector<2x32xf32>
    %38 = tpu.matmul %15, %19, %cst_30 {dimension_numbers = #tpu.dot_dimension_numbers<[1], [0], [0], [1], [0, 0, 1, 1], [], []>} : vector<2x16xf32>, vector<16x32xf32>, vector<2x32xf32> -> vector<2x32xf32>
    %39 = arith.addf %38, %23 : vector<2x32xf32>
    %40 = math.tanh %25 : vector<2x32xf32>
    %cst_31 = arith.constant dense<0.000000e+00> : vector<2x32xf32>
    %41 = tpu.matmul %40, %20, %cst_31 {dimension_numbers = #tpu.dot_dimension_numbers<[1], [0], [0], [1], [0, 0, 1, 1], [], []>} : vector<2x32xf32>, vector<32x32xf32>, vector<2x32xf32> -> vector<2x32xf32>
    %42 = arith.addf %27, %41 : vector<2x32xf32>
    %43 = math.tanh %42 : vector<2x32xf32>
    %cst_32 = arith.constant dense<0.000000e+00> : vector<2x32xf32>
    %44 = tpu.matmul %43, %20, %cst_32 {dimension_numbers = #tpu.dot_dimension_numbers<[1], [0], [0], [1], [0, 0, 1, 1], [], []>} : vector<2x32xf32>, vector<32x32xf32>, vector<2x32xf32> -> vector<2x32xf32>
    %45 = arith.addf %29, %44 : vector<2x32xf32>
    %46 = math.tanh %45 : vector<2x32xf32>
    %cst_33 = arith.constant dense<0.000000e+00> : vector<2x32xf32>
    %47 = tpu.matmul %46, %20, %cst_33 {dimension_numbers = #tpu.dot_dimension_numbers<[1], [0], [0], [1], [0, 0, 1, 1], [], []>} : vector<2x32xf32>, vector<32x32xf32>, vector<2x32xf32> -> vector<2x32xf32>
    %48 = arith.addf %31, %47 : vector<2x32xf32>
    %49 = math.tanh %48 : vector<2x32xf32>
    %cst_34 = arith.constant dense<0.000000e+00> : vector<2x32xf32>
    %50 = tpu.matmul %49, %20, %cst_34 {dimension_numbers = #tpu.dot_dimension_numbers<[1], [0], [0], [1], [0, 0, 1, 1], [], []>} : vector<2x32xf32>, vector<32x32xf32>, vector<2x32xf32> -> vector<2x32xf32>
    %51 = arith.addf %33, %50 : vector<2x32xf32>
    %52 = math.tanh %51 : vector<2x32xf32>
    %cst_35 = arith.constant dense<0.000000e+00> : vector<2x32xf32>
    %53 = tpu.matmul %52, %20, %cst_35 {dimension_numbers = #tpu.dot_dimension_numbers<[1], [0], [0], [1], [0, 0, 1, 1], [], []>} : vector<2x32xf32>, vector<32x32xf32>, vector<2x32xf32> -> vector<2x32xf32>
    %54 = arith.addf %35, %53 : vector<2x32xf32>
    %55 = math.tanh %54 : vector<2x32xf32>
    %cst_36 = arith.constant dense<0.000000e+00> : vector<2x32xf32>
    %56 = tpu.matmul %55, %20, %cst_36 {dimension_numbers = #tpu.dot_dimension_numbers<[1], [0], [0], [1], [0, 0, 1, 1], [], []>} : vector<2x32xf32>, vector<32x32xf32>, vector<2x32xf32> -> vector<2x32xf32>
    %57 = arith.addf %37, %56 : vector<2x32xf32>
    %58 = math.tanh %57 : vector<2x32xf32>
    %cst_37 = arith.constant dense<0.000000e+00> : vector<2x32xf32>
    %59 = tpu.matmul %58, %20, %cst_37 {dimension_numbers = #tpu.dot_dimension_numbers<[1], [0], [0], [1], [0, 0, 1, 1], [], []>} : vector<2x32xf32>, vector<32x32xf32>, vector<2x32xf32> -> vector<2x32xf32>
    %60 = arith.addf %39, %59 : vector<2x32xf32>
    %61 = math.tanh %60 : vector<2x32xf32>
    %c0_38 = arith.constant 0 : index
    %c0_39 = arith.constant 0 : index
    %62 = vector.load %arg4[%c0_38, %c0_39] : memref<32x32xf32, #tpu.memory_space<vmem>>, vector<32x32xf32>
    %c0_40 = arith.constant 0 : index
    %c0_41 = arith.constant 0 : index
    %63 = vector.load %arg5[%c0_40, %c0_41] : memref<32x32xf32, #tpu.memory_space<vmem>>, vector<32x32xf32>
    %c0_42 = arith.constant 0 : index
    %c0_43 = arith.constant 0 : index
    %64 = vector.load %arg6[%c0_42, %c0_43] : memref<1x32xf32, #tpu.memory_space<vmem>>, vector<1x32xf32>
    %65 = vector.shape_cast %64 : vector<1x32xf32> to vector<1x32xf32>
    %66 = vector.broadcast %65 : vector<1x32xf32> to vector<2x32xf32>
    %cst_44 = arith.constant dense<0.000000e+00> : vector<2x32xf32>
    %67 = tpu.matmul %40, %62, %cst_44 {dimension_numbers = #tpu.dot_dimension_numbers<[1], [0], [0], [1], [0, 0, 1, 1], [], []>} : vector<2x32xf32>, vector<32x32xf32>, vector<2x32xf32> -> vector<2x32xf32>
    %68 = arith.addf %67, %66 : vector<2x32xf32>
    %cst_45 = arith.constant dense<0.000000e+00> : vector<2x32xf32>
    %69 = tpu.matmul %43, %62, %cst_45 {dimension_numbers = #tpu.dot_dimension_numbers<[1], [0], [0], [1], [0, 0, 1, 1], [], []>} : vector<2x32xf32>, vector<32x32xf32>, vector<2x32xf32> -> vector<2x32xf32>
    %70 = arith.addf %69, %66 : vector<2x32xf32>
    %cst_46 = arith.constant dense<0.000000e+00> : vector<2x32xf32>
    %71 = tpu.matmul %46, %62, %cst_46 {dimension_numbers = #tpu.dot_dimension_numbers<[1], [0], [0], [1], [0, 0, 1, 1], [], []>} : vector<2x32xf32>, vector<32x32xf32>, vector<2x32xf32> -> vector<2x32xf32>
    %72 = arith.addf %71, %66 : vector<2x32xf32>
    %cst_47 = arith.constant dense<0.000000e+00> : vector<2x32xf32>
    %73 = tpu.matmul %49, %62, %cst_47 {dimension_numbers = #tpu.dot_dimension_numbers<[1], [0], [0], [1], [0, 0, 1, 1], [], []>} : vector<2x32xf32>, vector<32x32xf32>, vector<2x32xf32> -> vector<2x32xf32>
    %74 = arith.addf %73, %66 : vector<2x32xf32>
    %cst_48 = arith.constant dense<0.000000e+00> : vector<2x32xf32>
    %75 = tpu.matmul %52, %62, %cst_48 {dimension_numbers = #tpu.dot_dimension_numbers<[1], [0], [0], [1], [0, 0, 1, 1], [], []>} : vector<2x32xf32>, vector<32x32xf32>, vector<2x32xf32> -> vector<2x32xf32>
    %76 = arith.addf %75, %66 : vector<2x32xf32>
    %cst_49 = arith.constant dense<0.000000e+00> : vector<2x32xf32>
    %77 = tpu.matmul %55, %62, %cst_49 {dimension_numbers = #tpu.dot_dimension_numbers<[1], [0], [0], [1], [0, 0, 1, 1], [], []>} : vector<2x32xf32>, vector<32x32xf32>, vector<2x32xf32> -> vector<2x32xf32>
    %78 = arith.addf %77, %66 : vector<2x32xf32>
    %cst_50 = arith.constant dense<0.000000e+00> : vector<2x32xf32>
    %79 = tpu.matmul %58, %62, %cst_50 {dimension_numbers = #tpu.dot_dimension_numbers<[1], [0], [0], [1], [0, 0, 1, 1], [], []>} : vector<2x32xf32>, vector<32x32xf32>, vector<2x32xf32> -> vector<2x32xf32>
    %80 = arith.addf %79, %66 : vector<2x32xf32>
    %cst_51 = arith.constant dense<0.000000e+00> : vector<2x32xf32>
    %81 = tpu.matmul %61, %62, %cst_51 {dimension_numbers = #tpu.dot_dimension_numbers<[1], [0], [0], [1], [0, 0, 1, 1], [], []>} : vector<2x32xf32>, vector<32x32xf32>, vector<2x32xf32> -> vector<2x32xf32>
    %82 = arith.addf %81, %66 : vector<2x32xf32>
    %83 = math.tanh %68 : vector<2x32xf32>
    %c0_52 = arith.constant 0 : index
    %c0_53 = arith.constant 0 : index
    %c0_54 = arith.constant 0 : index
    %84 = vector.load %arg7[%c0_52, %c0_53, %c0_54] : memref<8x32x10xf32, #tpu.memory_space<vmem>>, vector<1x32x10xf32>
    %85 = vector.shape_cast %84 : vector<1x32x10xf32> to vector<32x10xf32>
    %cst_55 = arith.constant dense<0.000000e+00> : vector<2x10xf32>
    %86 = tpu.matmul %83, %85, %cst_55 {dimension_numbers = #tpu.dot_dimension_numbers<[1], [0], [0], [1], [0, 0, 1, 1], [], []>} : vector<2x32xf32>, vector<32x10xf32>, vector<2x10xf32> -> vector<2x10xf32>
    %87 = arith.addf %18, %86 : vector<2x10xf32>
    %cst_56 = arith.constant dense<0.000000e+00> : vector<2x32xf32>
    %88 = tpu.matmul %83, %63, %cst_56 {dimension_numbers = #tpu.dot_dimension_numbers<[1], [0], [0], [1], [0, 0, 1, 1], [], []>} : vector<2x32xf32>, vector<32x32xf32>, vector<2x32xf32> -> vector<2x32xf32>
    %89 = arith.addf %70, %88 : vector<2x32xf32>
    %90 = math.tanh %89 : vector<2x32xf32>
    %c1_57 = arith.constant 1 : index
    %c0_58 = arith.constant 0 : index
    %c0_59 = arith.constant 0 : index
    %91 = vector.load %arg7[%c1_57, %c0_58, %c0_59] : memref<8x32x10xf32, #tpu.memory_space<vmem>>, vector<1x32x10xf32>
    %92 = vector.shape_cast %91 : vector<1x32x10xf32> to vector<32x10xf32>
    %cst_60 = arith.constant dense<0.000000e+00> : vector<2x10xf32>
    %93 = tpu.matmul %90, %92, %cst_60 {dimension_numbers = #tpu.dot_dimension_numbers<[1], [0], [0], [1], [0, 0, 1, 1], [], []>} : vector<2x32xf32>, vector<32x10xf32>, vector<2x10xf32> -> vector<2x10xf32>
    %94 = arith.addf %87, %93 : vector<2x10xf32>
    %cst_61 = arith.constant dense<0.000000e+00> : vector<2x32xf32>
    %95 = tpu.matmul %90, %63, %cst_61 {dimension_numbers = #tpu.dot_dimension_numbers<[1], [0], [0], [1], [0, 0, 1, 1], [], []>} : vector<2x32xf32>, vector<32x32xf32>, vector<2x32xf32> -> vector<2x32xf32>
    %96 = arith.addf %72, %95 : vector<2x32xf32>
    %97 = math.tanh %96 : vector<2x32xf32>
    %c2_62 = arith.constant 2 : index
    %c0_63 = arith.constant 0 : index
    %c0_64 = arith.constant 0 : index
    %98 = vector.load %arg7[%c2_62, %c0_63, %c0_64] : memref<8x32x10xf32, #tpu.memory_space<vmem>>, vector<1x32x10xf32>
    %99 = vector.shape_cast %98 : vector<1x32x10xf32> to vector<32x10xf32>
    %cst_65 = arith.constant dense<0.000000e+00> : vector<2x10xf32>
    %100 = tpu.matmul %97, %99, %cst_65 {dimension_numbers = #tpu.dot_dimension_numbers<[1], [0], [0], [1], [0, 0, 1, 1], [], []>} : vector<2x32xf32>, vector<32x10xf32>, vector<2x10xf32> -> vector<2x10xf32>
    %101 = arith.addf %94, %100 : vector<2x10xf32>
    %cst_66 = arith.constant dense<0.000000e+00> : vector<2x32xf32>
    %102 = tpu.matmul %97, %63, %cst_66 {dimension_numbers = #tpu.dot_dimension_numbers<[1], [0], [0], [1], [0, 0, 1, 1], [], []>} : vector<2x32xf32>, vector<32x32xf32>, vector<2x32xf32> -> vector<2x32xf32>
    %103 = arith.addf %74, %102 : vector<2x32xf32>
    %104 = math.tanh %103 : vector<2x32xf32>
    %c3_67 = arith.constant 3 : index
    %c0_68 = arith.constant 0 : index
    %c0_69 = arith.constant 0 : index
    %105 = vector.load %arg7[%c3_67, %c0_68, %c0_69] : memref<8x32x10xf32, #tpu.memory_space<vmem>>, vector<1x32x10xf32>
    %106 = vector.shape_cast %105 : vector<1x32x10xf32> to vector<32x10xf32>
    %cst_70 = arith.constant dense<0.000000e+00> : vector<2x10xf32>
    %107 = tpu.matmul %104, %106, %cst_70 {dimension_numbers = #tpu.dot_dimension_numbers<[1], [0], [0], [1], [0, 0, 1, 1], [], []>} : vector<2x32xf32>, vector<32x10xf32>, vector<2x10xf32> -> vector<2x10xf32>
    %108 = arith.addf %101, %107 : vector<2x10xf32>
    %cst_71 = arith.constant dense<0.000000e+00> : vector<2x32xf32>
    %109 = tpu.matmul %104, %63, %cst_71 {dimension_numbers = #tpu.dot_dimension_numbers<[1], [0], [0], [1], [0, 0, 1, 1], [], []>} : vector<2x32xf32>, vector<32x32xf32>, vector<2x32xf32> -> vector<2x32xf32>
    %110 = arith.addf %76, %109 : vector<2x32xf32>
    %111 = math.tanh %110 : vector<2x32xf32>
    %c4_72 = arith.constant 4 : index
    %c0_73 = arith.constant 0 : index
    %c0_74 = arith.constant 0 : index
    %112 = vector.load %arg7[%c4_72, %c0_73, %c0_74] : memref<8x32x10xf32, #tpu.memory_space<vmem>>, vector<1x32x10xf32>
    %113 = vector.shape_cast %112 : vector<1x32x10xf32> to vector<32x10xf32>
    %cst_75 = arith.constant dense<0.000000e+00> : vector<2x10xf32>
    %114 = tpu.matmul %111, %113, %cst_75 {dimension_numbers = #tpu.dot_dimension_numbers<[1], [0], [0], [1], [0, 0, 1, 1], [], []>} : vector<2x32xf32>, vector<32x10xf32>, vector<2x10xf32> -> vector<2x10xf32>
    %115 = arith.addf %108, %114 : vector<2x10xf32>
    %cst_76 = arith.constant dense<0.000000e+00> : vector<2x32xf32>
    %116 = tpu.matmul %111, %63, %cst_76 {dimension_numbers = #tpu.dot_dimension_numbers<[1], [0], [0], [1], [0, 0, 1, 1], [], []>} : vector<2x32xf32>, vector<32x32xf32>, vector<2x32xf32> -> vector<2x32xf32>
    %117 = arith.addf %78, %116 : vector<2x32xf32>
    %118 = math.tanh %117 : vector<2x32xf32>
    %c5_77 = arith.constant 5 : index
    %c0_78 = arith.constant 0 : index
    %c0_79 = arith.constant 0 : index
    %119 = vector.load %arg7[%c5_77, %c0_78, %c0_79] : memref<8x32x10xf32, #tpu.memory_space<vmem>>, vector<1x32x10xf32>
    %120 = vector.shape_cast %119 : vector<1x32x10xf32> to vector<32x10xf32>
    %cst_80 = arith.constant dense<0.000000e+00> : vector<2x10xf32>
    %121 = tpu.matmul %118, %120, %cst_80 {dimension_numbers = #tpu.dot_dimension_numbers<[1], [0], [0], [1], [0, 0, 1, 1], [], []>} : vector<2x32xf32>, vector<32x10xf32>, vector<2x10xf32> -> vector<2x10xf32>
    %122 = arith.addf %115, %121 : vector<2x10xf32>
    %cst_81 = arith.constant dense<0.000000e+00> : vector<2x32xf32>
    %123 = tpu.matmul %118, %63, %cst_81 {dimension_numbers = #tpu.dot_dimension_numbers<[1], [0], [0], [1], [0, 0, 1, 1], [], []>} : vector<2x32xf32>, vector<32x32xf32>, vector<2x32xf32> -> vector<2x32xf32>
    %124 = arith.addf %80, %123 : vector<2x32xf32>
    %125 = math.tanh %124 : vector<2x32xf32>
    %c6_82 = arith.constant 6 : index
    %c0_83 = arith.constant 0 : index
    %c0_84 = arith.constant 0 : index
    %126 = vector.load %arg7[%c6_82, %c0_83, %c0_84] : memref<8x32x10xf32, #tpu.memory_space<vmem>>, vector<1x32x10xf32>
    %127 = vector.shape_cast %126 : vector<1x32x10xf32> to vector<32x10xf32>
    %cst_85 = arith.constant dense<0.000000e+00> : vector<2x10xf32>
    %128 = tpu.matmul %125, %127, %cst_85 {dimension_numbers = #tpu.dot_dimension_numbers<[1], [0], [0], [1], [0, 0, 1, 1], [], []>} : vector<2x32xf32>, vector<32x10xf32>, vector<2x10xf32> -> vector<2x10xf32>
    %129 = arith.addf %122, %128 : vector<2x10xf32>
    %cst_86 = arith.constant dense<0.000000e+00> : vector<2x32xf32>
    %130 = tpu.matmul %125, %63, %cst_86 {dimension_numbers = #tpu.dot_dimension_numbers<[1], [0], [0], [1], [0, 0, 1, 1], [], []>} : vector<2x32xf32>, vector<32x32xf32>, vector<2x32xf32> -> vector<2x32xf32>
    %131 = arith.addf %82, %130 : vector<2x32xf32>
    %132 = math.tanh %131 : vector<2x32xf32>
    %c7_87 = arith.constant 7 : index
    %c0_88 = arith.constant 0 : index
    %c0_89 = arith.constant 0 : index
    %133 = vector.load %arg7[%c7_87, %c0_88, %c0_89] : memref<8x32x10xf32, #tpu.memory_space<vmem>>, vector<1x32x10xf32>
    %134 = vector.shape_cast %133 : vector<1x32x10xf32> to vector<32x10xf32>
    %cst_90 = arith.constant dense<0.000000e+00> : vector<2x10xf32>
    %135 = tpu.matmul %132, %134, %cst_90 {dimension_numbers = #tpu.dot_dimension_numbers<[1], [0], [0], [1], [0, 0, 1, 1], [], []>} : vector<2x32xf32>, vector<32x10xf32>, vector<2x10xf32> -> vector<2x10xf32>
    %136 = arith.addf %129, %135 : vector<2x10xf32>
    %c0_91 = arith.constant 0 : index
    %c0_92 = arith.constant 0 : index
    %137 = vector.load %arg9[%c0_91, %c0_92] : memref<2x10xf32, #tpu.memory_space<vmem>>, vector<2x10xf32>
    tpu.vector_store %arg9[%c0_91, %c0_92], %136 {strides = array<i32>} : memref<2x10xf32, #tpu.memory_space<vmem>>, vector<2x10xf32>,
    return
  }
}

</mosaic_0001>

<bundles_post_ra>
// kernel: rnn_model_forward.1
= control target key start
LH: loop header
LB: loop body
LE: loop exit
PB: predicated region body
PF: predicated region fallthrough
CT: control target
= control target key end

     0   :  { %vm62_vm0 = vcmask 130048   ;;  %s1531_s0 = inlined_call_operand.vmem [shape: f32[8,2,16], index: 0, kind: input, shape index: {}]   ;;  %s1532_s1 = inlined_call_operand.vmem [shape: f32[16,32], index: 1, kind: input, shape index: {}]   ;;  %s1533_s2 = inlined_call_operand.vmem [shape: f32[32,32], index: 2, kind: input, shape index: {}]   ;;  %s1534_s3 = inlined_call_operand.vmem [shape: f32[1,32], index: 3, kind: input, shape index: {}]   ;;  %s1535_s4 = inlined_call_operand.vmem [shape: f32[32,32], index: 4, kind: input, shape index: {}]   ;;  %s1536_s5 = inlined_call_operand.vmem [shape: f32[32,32], index: 5, kind: input, shape index: {}]   ;;  %s1537_s6 = inlined_call_operand.vmem [shape: f32[1,32], index: 6, kind: input, shape index: {}]   ;;  %s1538_s7 = inlined_call_operand.vmem [shape: f32[8,32,10], index: 7, kind: input, shape index: {}]   ;;  %s1539_s8 = inlined_call_operand.vmem [shape: f32[1,10], index: 8, kind: input, shape index: {}]   ;;  %s1540_s9 = inlined_call_operand.hbm [shape: f32[2,10], index: 9, kind: output, shape index: {}]  }
   0x1   :  { %v53_v0 = vld [vmem:[%s1532_s1 + $0x8] sm:$0xff]  ;;  %v52_v1 = vld [vmem:[%s1532_s1] sm:$0xff] }
   0x2   :  { %v33_v2 = vld [vmem:[%s1531_s0] sm:$0x3]  ;;  %80 = vmatpush.msra.mxu0 %v53_v0  ;;  %103 = vmatpush.msra.mxu1 %v53_v0 }
   0x3   :  { %126 = vmatpush.msra.mxu2 %v53_v0  ;;  %149 = vmatpush.msra.mxu3 %v53_v0 }
   0x4   :  { %14 = vsyncpa [#allocation3], 0  ;;  %81 = vmatpush.msra.mxu0 %v52_v1  ;;  %104 = vmatpush.msra.mxu1 %v52_v1  ;;  %v1006_v3 = vld [vmem:[%s1531_s0 + $0x8] sm:$0x3]  ;;  %v57_v4 = vld [vmem:[%s1533_s2 + $0x18] sm:$0xff]  ;;  %vm248_vm1 = vcmask 261120  }
   0x5   :  { %1010 = vmatmul.msk.f32.vlgmr.msra.gmra.mxu0 %vm62_vm0, %v33_v2  ;;  %127 = vmatpush.msra.mxu2 %v52_v1  ;;  %v56_v5 = vld [vmem:[%s1533_s2 + $0x10] sm:$0xff]  ;;  %v1003_v6 = vld [vmem:[%s1531_s0 + $0x2] sm:$0x3]  ;;  %v55_v7 = vld [vmem:[%s1533_s2 + $0x8] sm:$0xff]  ;;  %s994_s17 = sshll.u32 %s1540_s9, 4  ;;  %vm985_vm2 = vcmask 74752   ;;  %s995_s17 = int_to_ptr.hbm [resolvable:$true] %s994_s17 }
   0x6   :  { %195 = vmatpush.msrb.mxu1 %v53_v0  ;;  %172 = vmatpush.msrb.mxu0 %v53_v0  ;;  %v54_v8 = vld [vmem:[%s1533_s2] sm:$0xff]  ;;  %v1007_v14 = vld [vmem:[%s1531_s0 + $0xa] sm:$0x3]  ;;  %v1008_v21 = vld [vmem:[%s1531_s0 + $0xc] sm:$0x3] }
   0x7   :  { %218 = vmatpush.msrb.mxu2 %v53_v0  ;;  %150 = vmatpush.msra.mxu3 %v52_v1  ;;  %v1222_v9 = vld [vmem:[%s1534_s3] ss:$0 sm:$0xff]  ;;  %v1004_v13 = vld [vmem:[%s1531_s0 + $0x4] sm:$0x3]  ;;  %v1005_v22 = vld [vmem:[%s1531_s0 + $0x6] sm:$0x3] }
   0x8   :  { %196 = vmatpush.msrb.mxu1 %v52_v1  ;;  %173 = vmatpush.msrb.mxu0 %v52_v1  ;;  %v1009_v29 = vld [vmem:[%s1531_s0 + $0xe] sm:$0x3]  ;;  %v1266_v30 = vld [vmem:[%s1535_s4 + $0x18] sm:$0xff]  ;;  %v1271_v31 = vld [vmem:[%s1535_s4 + $0x10] sm:$0xff] }
   0x9   :  { %219 = vmatpush.msrb.mxu2 %v52_v1  ;;  %241 = vmatpush.msrb.mxu3 %v53_v0  ;;  %v1278_v32 = vld [vmem:[%s1535_s4 + $0x8] sm:$0xff]  ;;  %v1287_v33 = vld [vmem:[%s1535_s4] sm:$0xff]  ;;  %v603_v40 = vld [vmem:[%s1538_s7 + $0x18] sm:$0xff] }
   0xa   :  { %264 = vmatpush.msra.mxu0 %v57_v4  ;;  %1011 = vmatmul.msk.f32.vlgmr.msra.gmra.mxu1 %vm62_vm0, %v1003_v6  ;;  %v602_v41 = vld [vmem:[%s1538_s7 + $0x10] sm:$0xff]  ;;  %v601_v42 = vld [vmem:[%s1538_s7 + $0x8] sm:$0xff]  ;;  %v600_v43 = vld [vmem:[%s1538_s7] sm:$0xff] }
   0xb   :  { %242 = vmatpush.msrb.mxu3 %v52_v1  ;;  %289 = vmatpush.msra.mxu1 %v57_v4  ;;  %v1331_v48 = vld [vmem:[%s1537_s6] ss:$0 sm:$0xff]  ;;  %v1346_v53 = vld [vmem:[%s1536_s5 + $0x18] sm:$0xff]  ;;  %v1351_v54 = vld [vmem:[%s1536_s5 + $0x10] sm:$0xff] }
   0xc   :  { %265 = vmatpush.msra.mxu0 %v56_v5  ;;  %1012 = vmatmul.msk.f32.vlgmr.msra.gmra.mxu2 %vm62_vm0, %v1004_v13  ;;  %v1358_v55 = vld [vmem:[%s1536_s5 + $0x8] sm:$0xff]  ;;  %v1364_v56 = vld [vmem:[%s1536_s5] sm:$0xff]  ;;  %v1038_v61 = vld [vmem:[%s1538_s7 + $0x38] sm:$0xff] }
   0xd   :  { %1014 = vmatmul.msk.f32.vlgmr.msrb.gmra.mxu0 %vm62_vm0, %v1006_v3  ;;  %290 = vmatpush.msra.mxu1 %v56_v5  ;;  %v1037_v62 = vld [vmem:[%s1538_s7 + $0x30] sm:$0xff]  ;;  %v1036_v63 = vld [vmem:[%s1538_s7 + $0x28] sm:$0xff]  ;;  %v1035_v0 = vld [vmem:[%s1538_s7 + $0x20] sm:$0xff] }
   0xe   :  { %266 = vmatpush.msra.mxu0 %v55_v7  ;;  %314 = vmatpush.msra.mxu2 %v57_v4 }
   0xf   :  { %291 = vmatpush.msra.mxu1 %v55_v7  ;;  %1013 = vmatmul.msk.f32.vlgmr.msra.gmra.mxu3 %vm62_vm0, %v1005_v22 }
  0x10   :  { %267 = vmatpush.msra.mxu0 %v54_v8  ;;  %315 = vmatpush.msra.mxu2 %v56_v5 }
  0x11   :  { %292 = vmatpush.msra.mxu1 %v54_v8  ;;  %339 = vmatpush.msra.mxu3 %v57_v4 }
  0x12   :  { %364 = vmatpush.msrb.mxu0 %v57_v4  ;;  %1015 = vmatmul.msk.f32.vlgmr.msrb.gmra.mxu1 %vm62_vm0, %v1007_v14 }
  0x13   :  { %389 = vmatpush.msrb.mxu1 %v57_v4  ;;  %316 = vmatpush.msra.mxu2 %v55_v7 }
  0x14   :  { %365 = vmatpush.msrb.mxu0 %v56_v5  ;;  %1016 = vmatmul.msk.f32.vlgmr.msrb.gmra.mxu2 %vm62_vm0, %v1008_v21 }
  0x15   :  { %390 = vmatpush.msrb.mxu1 %v56_v5  ;;  %317 = vmatpush.msra.mxu2 %v54_v8 }
  0x16   :  { %366 = vmatpush.msrb.mxu0 %v55_v7  ;;  %340 = vmatpush.msra.mxu3 %v56_v5 }
  0x17   :  { %391 = vmatpush.msrb.mxu1 %v55_v7  ;;  %414 = vmatpush.msrb.mxu2 %v57_v4 }
  0x18   :  { %367 = vmatpush.msrb.mxu0 %v54_v8  ;;  %341 = vmatpush.msra.mxu3 %v55_v7 }
  0x19   :  { %392 = vmatpush.msrb.mxu1 %v54_v8  ;;  %415 = vmatpush.msrb.mxu2 %v56_v5 }
  0x1a   :  { %342 = vmatpush.msra.mxu3 %v54_v8 }
  0x1b   :  { %416 = vmatpush.msrb.mxu2 %v55_v7  ;;  %1017 = vmatmul.msk.f32.vlgmr.msrb.gmra.mxu3 %vm62_vm0, %v1009_v29  ;;  %v1047_v29 = vld [vmem:[%s1538_s7 + $0x60] sm:$0xff] }
  0x1c   :  { %448 = vmatpush.msrb.mxu3 %v1266_v30 }
  0x1d   :  { %417 = vmatpush.msrb.mxu2 %v54_v8 }
  0x1e   :  { %449 = vmatpush.msrb.mxu3 %v1271_v31 }
  0x20   :  { %450 = vmatpush.msrb.mxu3 %v1278_v32 }
  0x22   :  { %451 = vmatpush.msrb.mxu3 %v1287_v33 }
  0x82   :  { %v83_v10 = vpop.f32.mrf.mxu0 }
  0x83   :  { %v84_v11 = vadd.f32 %v1222_v9, %v83_v10 }
  0x85   :  { %1080 = vtanh.f32 %v84_v11 }
  0x87   :  { %v106_v16 = vpop.f32.mrf.mxu1 }
  0x88   :  { %v107_v17 = vadd.f32 %v1222_v9, %v106_v16  ;;  %v1043_v16 = vld [vmem:[%s1538_s7 + $0x50] sm:$0xff] }
  0x8a   :  { %v1237_v15 = vpop.f32.mrf.mxu0 }
  0x8b   :  { %v1225_v12 = vpop.eup %1080  ;;  %v176_v45 = vadd.f32 %v1222_v9, %v1237_v15 }
  0x8c   :  { %1018 = vmatmul.msk.f32.vlgmr.msra.gmra.mxu0 %vm248_vm1, %v1225_v12 }
  0x8d   :  { %468 = vmatpush.msra.mxu0 %v1266_v30 }
  0x8f   :  { %v1252_v23 = vpop.f32.mrf.mxu1  ;;  %v129_v24 = vpop.f32.mrf.mxu2  ;;  %469 = vmatpush.msra.mxu0 %v1271_v31 }
  0x90   :  { %v130_v25 = vadd.f32 %v1222_v9, %v129_v24  ;;  %v199_v57 = vadd.f32 %v1222_v9, %v1252_v23 }
  0x91   :  { %470 = vmatpush.msra.mxu0 %v1278_v32 }
  0x92   :  { %v152_v35 = vpop.f32.mrf.mxu3 }
  0x93   :  { %471 = vmatpush.msra.mxu0 %v1287_v33  ;;  %v153_v36 = vadd.f32 %v1222_v9, %v152_v35  ;;  %v1055_v35 = vld [vmem:[%s1538_s7 + $0x90] sm:$0xff] }
  0x97   :  { %v1299_v34 = vpop.f32.mrf.mxu2 }
  0x98   :  { %v222_v2 = vadd.f32 %v1222_v9, %v1299_v34  ;;  %v1056_v34 = vld [vmem:[%s1538_s7 + $0x98] sm:$0xff] }
  0x9e   :  { %v1324_v44 = vpop.f32.mrf.mxu3 }
 0x109   :  { %v269_v18 = vpop.f32.mrf.mxu0 }
 0x10a   :  { %v272_v19 = vadd.f32 %v269_v18, %v107_v17  ;;  %v1042_v17 = vld [vmem:[%s1538_s7 + $0x48] sm:$0xff]  ;;  %v1041_v18 = vld [vmem:[%s1538_s7 + $0x40] sm:$0xff] }
 0x10c   :  { %1082 = vtanh.f32 %v272_v19 }
 0x112   :  { %v1240_v20 = vpop.eup %1082 }
 0x113   :  { %1019 = vmatmul.msk.f32.vlgmr.msra.gmra.mxu1 %vm248_vm1, %v1240_v20 }
 0x114   :  { %488 = vmatpush.msra.mxu1 %v1266_v30 }
 0x116   :  { %489 = vmatpush.msra.mxu1 %v1271_v31 }
 0x118   :  { %490 = vmatpush.msra.mxu1 %v1278_v32 }
 0x11a   :  { %491 = vmatpush.msra.mxu1 %v1287_v33 }
 0x190   :  { %v294_v26 = vpop.f32.mrf.mxu1 }
 0x191   :  { %v297_v27 = vadd.f32 %v294_v26, %v130_v25  ;;  %v1050_v26 = vld [vmem:[%s1538_s7 + $0x78] sm:$0xff] }
 0x193   :  { %1084 = vtanh.f32 %v297_v27  ;;  %v1049_v27 = vld [vmem:[%s1538_s7 + $0x70] sm:$0xff] }
 0x199   :  { %v1255_v28 = vpop.eup %1084 }
 0x19a   :  { %1020 = vmatmul.msk.f32.vlgmr.msra.gmra.mxu2 %vm248_vm1, %v1255_v28 }
 0x19b   :  { %508 = vmatpush.msra.mxu2 %v1266_v30 }
 0x19d   :  { %509 = vmatpush.msra.mxu2 %v1271_v31 }
 0x19f   :  { %510 = vmatpush.msra.mxu2 %v1278_v32 }
 0x1a1   :  { %511 = vmatpush.msra.mxu2 %v1287_v33 }
 0x21d   :  { %v319_v37 = vpop.f32.mrf.mxu2 }
 0x21e   :  { %v322_v38 = vadd.f32 %v319_v37, %v153_v36  ;;  %v1054_v36 = vld [vmem:[%s1538_s7 + $0x88] sm:$0xff]  ;;  %v1053_v37 = vld [vmem:[%s1538_s7 + $0x80] sm:$0xff] }
 0x220   :  { %1086 = vtanh.f32 %v322_v38 }
 0x226   :  { %v1302_v39 = vpop.eup %1086 }
 0x227   :  { %1021 = vmatmul.msk.f32.vlgmr.msra.gmra.mxu3 %vm248_vm1, %v1302_v39 }
 0x228   :  { %528 = vmatpush.msra.mxu3 %v1266_v30 }
 0x22a   :  { %529 = vmatpush.msra.mxu3 %v1271_v31 }
 0x22c   :  { %530 = vmatpush.msra.mxu3 %v1278_v32 }
 0x22e   :  { %531 = vmatpush.msra.mxu3 %v1287_v33 }
 0x22f   :  { %1025 = vmatmul.msk.f32.vlgmr.msrb.gmra.mxu3 %vm248_vm1, %v1225_v12  ;;  %v245_v12 = vadd.f32 %v1222_v9, %v1324_v44  ;;  %v1044_v9 = vld [vmem:[%s1538_s7 + $0x58] sm:$0xff]  ;;  %v1061_v44 = vld [vmem:[%s1538_s7 + $0xb0] sm:$0xff] }
 0x230   :  { %619 = vmatpush.msrb.mxu3 %v603_v40 }
 0x232   :  { %620 = vmatpush.msrb.mxu3 %v602_v41 }
 0x234   :  { %621 = vmatpush.msrb.mxu3 %v601_v42 }
 0x236   :  { %622 = vmatpush.msrb.mxu3 %v600_v43  ;;  %v1062_v43 = vld [vmem:[%s1538_s7 + $0xb8] sm:$0xff] }
 0x2aa   :  { %v344_v46 = vpop.f32.mrf.mxu3 }
 0x2ab   :  { %v347_v47 = vadd.f32 %v344_v46, %v176_v45  ;;  %v1060_v45 = vld [vmem:[%s1538_s7 + $0xa8] sm:$0xff]  ;;  %v1059_v46 = vld [vmem:[%s1538_s7 + $0xa0] sm:$0xff] }
 0x2ad   :  { %1088 = vtanh.f32 %v347_v47 }
 0x2b2   :  { %v453_v49 = vpop.f32.mrf.mxu3 }
 0x2b3   :  { %v1089_v50 = vpop.eup %1088  ;;  %v454_v51 = vadd.f32 %v1331_v48, %v453_v49 }
 0x2b4   :  { %1022 = vmatmul.msk.f32.vlgmr.msrb.gmra.mxu0 %vm248_vm1, %v1089_v50  ;;  %1029 = vmatmul.msk.f32.vlgmr.msra.gmra.mxu3 %vm248_vm1, %v1089_v50 }
 0x2b5   :  { %1090 = vtanh.f32 %v454_v51  ;;  %548 = vmatpush.msrb.mxu0 %v1266_v30  ;;  %721 = vmatpush.msra.mxu3 %v1044_v9 }
 0x2b7   :  { %549 = vmatpush.msrb.mxu0 %v1271_v31  ;;  %722 = vmatpush.msra.mxu3 %v1043_v16 }
 0x2b9   :  { %550 = vmatpush.msrb.mxu0 %v1278_v32  ;;  %723 = vmatpush.msra.mxu3 %v1042_v17 }
 0x2bb   :  { %v1091_v52 = vpop.eup %1090  ;;  %551 = vmatpush.msrb.mxu0 %v1287_v33  ;;  %724 = vmatpush.msra.mxu3 %v1041_v18 }
 0x2bc   :  { %1026 = vmatmul.msk.f32.vlgmr.msra.gmra.mxu0 %vm248_vm1, %v1240_v20  ;;  %1033 = vmatmul.msk.f32.vlgmr.msrb.gmra.mxu3 %vm248_vm1, %v1091_v52 }
 0x2bd   :  { %640 = vmatpush.msra.mxu0 %v1346_v53  ;;  %823 = vmatpush.msrb.mxu3 %v1056_v34 }
 0x2bf   :  { %641 = vmatpush.msra.mxu0 %v1351_v54  ;;  %824 = vmatpush.msrb.mxu3 %v1055_v35 }
 0x2c1   :  { %642 = vmatpush.msra.mxu0 %v1358_v55  ;;  %825 = vmatpush.msrb.mxu3 %v1054_v36 }
 0x2c3   :  { %643 = vmatpush.msra.mxu0 %v1364_v56  ;;  %826 = vmatpush.msrb.mxu3 %v1053_v37 }
 0x331   :  { %v369_v58 = vpop.f32.mrf.mxu0 }
 0x332   :  { %v372_v59 = vadd.f32 %v369_v58, %v199_v57 }
 0x334   :  { %1092 = vtanh.f32 %v372_v59 }
 0x337   :  { %v533_v38 = vpop.f32.mrf.mxu3 }
 0x339   :  { %v473_v1 = vpop.f32.mrf.mxu0 }
 0x33a   :  { %v1093_v60 = vpop.eup %1092  ;;  %v474_v6 = vadd.f32 %v1331_v48, %v473_v1 }
 0x33b   :  { %1023 = vmatmul.msk.f32.vlgmr.msrb.gmra.mxu1 %vm248_vm1, %v1093_v60  ;;  %1030 = vmatmul.msk.f32.vlgmr.msrb.gmra.mxu0 %vm248_vm1, %v1093_v60 }
 0x33c   :  { %568 = vmatpush.msrb.mxu1 %v1266_v30  ;;  %742 = vmatpush.msrb.mxu0 %v1346_v53 }
 0x33e   :  { %569 = vmatpush.msrb.mxu1 %v1271_v31  ;;  %743 = vmatpush.msrb.mxu0 %v1351_v54 }
 0x340   :  { %570 = vmatpush.msrb.mxu1 %v1278_v32  ;;  %744 = vmatpush.msrb.mxu0 %v1358_v55 }
 0x342   :  { %571 = vmatpush.msrb.mxu1 %v1287_v33  ;;  %745 = vmatpush.msrb.mxu0 %v1364_v56 }
 0x343   :  { %1027 = vmatmul.msk.f32.vlgmr.msra.gmra.mxu1 %vm248_vm1, %v1255_v28  ;;  %1034 = vmatmul.msk.f32.vlgmr.msra.gmra.mxu0 %vm248_vm1, %v1091_v52  ;;  %v1048_v28 = vld [vmem:[%s1538_s7 + $0x68] sm:$0xff]  ;;  %v1068_v52 = vld [vmem:[%s1538_s7 + $0xd8] sm:$0xff] }
 0x344   :  { %844 = vmatpush.msra.mxu0 %v1346_v53  ;;  %670 = vmatpush.msra.mxu1 %v1038_v61  ;;  %v1074_v61 = vld [vmem:[%s1538_s7 + $0xf8] sm:$0xff] }
 0x346   :  { %845 = vmatpush.msra.mxu0 %v1351_v54  ;;  %671 = vmatpush.msra.mxu1 %v1037_v62  ;;  %v1073_v62 = vld [vmem:[%s1538_s7 + $0xf0] sm:$0xff] }
 0x348   :  { %846 = vmatpush.msra.mxu0 %v1358_v55  ;;  %672 = vmatpush.msra.mxu1 %v1036_v63  ;;  %v1072_v63 = vld [vmem:[%s1538_s7 + $0xe8] sm:$0xff] }
 0x34a   :  { %847 = vmatpush.msra.mxu0 %v1364_v56  ;;  %673 = vmatpush.msra.mxu1 %v1035_v0  ;;  %v1071_v0 = vld [vmem:[%s1538_s7 + $0xe0] sm:$0xff] }
 0x3b8   :  { %v394_v3 = vpop.f32.mrf.mxu1  ;;  %v1400_v4 = vpop.f32.mrf.mxu0 }
 0x3b9   :  { %v397_v5 = vadd.f32 %v394_v3, %v222_v2  ;;  %v554_v47 = vadd.f32 %v1331_v48, %v1400_v4 }
 0x3bb   :  { %1094 = vtanh.f32 %v397_v5  ;;  %v624_v5 = vpop.f32.mrf.mxu3 }
 0x3c0   :  { %v645_v7 = vpop.f32.mrf.mxu0  ;;  %v493_v21 = vpop.f32.mrf.mxu1 }
 0x3c1   :  { %v1095_v8 = vpop.eup %1094  ;;  %v648_v10 = vadd.f32 %v645_v7, %v474_v6  ;;  %v494_v22 = vadd.f32 %v1331_v48, %v493_v21 }
 0x3c2   :  { %1024 = vmatmul.msk.f32.vlgmr.msrb.gmra.mxu2 %vm248_vm1, %v1095_v8  ;;  %1031 = vmatmul.msk.f32.vlgmr.msrb.gmra.mxu1 %vm248_vm1, %v1095_v8  ;;  %v1079_v8 = vld [vmem:[%s1539_s8] ss:$0 sm:$0xff] }
 0x3c3   :  { %1096 = vtanh.f32 %v648_v10  ;;  %591 = vmatpush.msrb.mxu2 %v1266_v30  ;;  %772 = vmatpush.msrb.mxu1 %v1050_v26 }
 0x3c5   :  { %592 = vmatpush.msrb.mxu2 %v1271_v31  ;;  %773 = vmatpush.msrb.mxu1 %v1049_v27 }
 0x3c7   :  { %593 = vmatpush.msrb.mxu2 %v1278_v32  ;;  %774 = vmatpush.msrb.mxu1 %v1048_v28 }
 0x3c9   :  { %v1097_v11 = vpop.eup %1096  ;;  %594 = vmatpush.msrb.mxu2 %v1287_v33  ;;  %775 = vmatpush.msrb.mxu1 %v1047_v29 }
 0x3ca   :  { %1028 = vmatmul.msk.f32.vlgmr.msra.gmra.mxu2 %vm248_vm1, %v1302_v39  ;;  %1039 = vmatmul.msk.f32.vlgmr.msra.gmra.mxu1 %vm248_vm1, %v1097_v11  ;;  %v534_v39 = vadd.f32 %v1331_v48, %v533_v38 }
 0x3cb   :  { %691 = vmatpush.msra.mxu2 %v1346_v53  ;;  %874 = vmatpush.msra.mxu1 %v1062_v43 }
 0x3cd   :  { %692 = vmatpush.msra.mxu2 %v1351_v54  ;;  %875 = vmatpush.msra.mxu1 %v1061_v44 }
 0x3cf   :  { %693 = vmatpush.msra.mxu2 %v1358_v55  ;;  %876 = vmatpush.msra.mxu1 %v1060_v45 }
 0x3d1   :  { %694 = vmatpush.msra.mxu2 %v1364_v56  ;;  %877 = vmatpush.msra.mxu1 %v1059_v46 }
 0x445   :  { %v419_v13 = vpop.f32.mrf.mxu2 }
 0x446   :  { %v422_v14 = vadd.f32 %v419_v13, %v245_v12 }
 0x448   :  { %1098 = vtanh.f32 %v422_v14 }
 0x44d   :  { %v513_v19 = vpop.f32.mrf.mxu2 }
 0x44e   :  { %v1099_v15 = vpop.eup %1098  ;;  %v514_v30 = vadd.f32 %v1331_v48, %v513_v19 }
 0x44f   :  { %1032 = vmatmul.msk.f32.vlgmr.msrb.gmra.mxu2 %vm248_vm1, %v1099_v15 }
 0x450   :  { %793 = vmatpush.msrb.mxu2 %v1346_v53 }
 0x452   :  { %794 = vmatpush.msrb.mxu2 %v1351_v54 }
 0x454   :  { %795 = vmatpush.msrb.mxu2 %v1358_v55 }
 0x456   :  { %796 = vmatpush.msrb.mxu2 %v1364_v56 }
 0x457   :  { %1040 = vmatmul.msk.f32.vlgmr.msra.gmra.mxu2 %vm248_vm1, %v1097_v11  ;;  %v627_v11 = vadd.f32 %v1079_v8, %v624_v5 }
 0x458   :  { %895 = vmatpush.msra.mxu2 %v1346_v53 }
 0x45a   :  { %896 = vmatpush.msra.mxu2 %v1351_v54 }
 0x45c   :  { %897 = vmatpush.msra.mxu2 %v1358_v55 }
 0x45e   :  { %898 = vmatpush.msra.mxu2 %v1364_v56 }
 0x4d2   :  { %v1440_v20 = vpop.f32.mrf.mxu2 }
 0x4d3   :  { %v597_v1 = vadd.f32 %v1331_v48, %v1440_v20 }
 0x4da   :  { %v696_v23 = vpop.f32.mrf.mxu2 }
 0x4db   :  { %v699_v24 = vadd.f32 %v696_v23, %v494_v22 }
 0x4dd   :  { %1100 = vtanh.f32 %v699_v24 }
 0x4e3   :  { %v1101_v25 = vpop.eup %1100 }
 0x4e4   :  { %1045 = vmatmul.msk.f32.vlgmr.msra.gmra.mxu3 %vm248_vm1, %v1101_v25  ;;  %1046 = vmatmul.msk.f32.vlgmr.msrb.gmra.mxu0 %vm248_vm1, %v1101_v25 }
 0x4e5   :  { %946 = vmatpush.msrb.mxu0 %v1346_v53  ;;  %925 = vmatpush.msra.mxu3 %v1068_v52  ;;  %v1067_v53 = vld [vmem:[%s1538_s7 + $0xd0] sm:$0xff] }
 0x4e7   :  { %947 = vmatpush.msrb.mxu0 %v1351_v54  ;;  %v1066_v54 = vld [vmem:[%s1538_s7 + $0xc8] sm:$0xff]  ;;  %926 = vmatpush.msra.mxu3 %v1067_v53 }
 0x4e9   :  { %948 = vmatpush.msrb.mxu0 %v1358_v55  ;;  %v1065_v55 = vld [vmem:[%s1538_s7 + $0xc0] sm:$0xff]  ;;  %927 = vmatpush.msra.mxu3 %v1066_v54  ;;  %s1138_s7 = smov [#allocation2]  }
 0x4ea   :  { %s992_s1 = sshll.u32 %s1138_s7, 4  ;;  %s993_s1 = int_to_ptr.vmem [resolvable:$true] %s992_s1 }
 0x4eb   :  { %949 = vmatpush.msrb.mxu0 %v1364_v56  ;;  %928 = vmatpush.msra.mxu3 %v1065_v55  ;;  %v573_v56 = vpop.f32.mrf.mxu1 }
 0x4ec   :  { %v574_v57 = vadd.f32 %v1331_v48, %v573_v56 }
 0x4f3   :  { %v675_v6 = vpop.f32.mrf.mxu1 }
 0x4f4   :  { %v678_v13 = vadd.f32 %v675_v6, %v627_v11 }
 0x561   :  { %v747_v31 = vpop.f32.mrf.mxu0 }
 0x562   :  { %v750_v32 = vadd.f32 %v747_v31, %v514_v30 }
 0x564   :  { %1102 = vtanh.f32 %v750_v32 }
 0x567   :  { %v726_v7 = vpop.f32.mrf.mxu3 }
 0x568   :  { %v729_v14 = vadd.f32 %v726_v7, %v678_v13 }
 0x56a   :  { %v1103_v33 = vpop.eup %1102 }
 0x56b   :  { %1051 = vmatmul.msk.f32.vlgmr.msrb.gmra.mxu1 %vm248_vm1, %v1103_v33  ;;  %1052 = vmatmul.msk.f32.vlgmr.msrb.gmra.mxu2 %vm248_vm1, %v1103_v33 }
 0x56c   :  { %976 = vmatpush.msrb.mxu1 %v1074_v61 }
 0x56e   :  { %977 = vmatpush.msrb.mxu1 %v1073_v62 }
 0x570   :  { %978 = vmatpush.msrb.mxu1 %v1072_v63 }
 0x572   :  { %979 = vmatpush.msrb.mxu1 %v1071_v0 }
 0x5e8   :  { %v777_v10 = vpop.f32.mrf.mxu1 }
 0x5e9   :  { %v780_v48 = vadd.f32 %v777_v10, %v729_v14 }
 0x5ee   :  { %v798_v40 = vpop.f32.mrf.mxu2 }
 0x5ef   :  { %v801_v41 = vadd.f32 %v798_v40, %v534_v39 }
 0x5f1   :  { %1104 = vtanh.f32 %v801_v41 }
 0x5f7   :  { %v1105_v42 = vpop.eup %1104 }
 0x5f8   :  { %1057 = vmatmul.msk.f32.vlgmr.msrb.gmra.mxu3 %vm248_vm1, %v1105_v42  ;;  %1058 = vmatmul.msk.f32.vlgmr.msra.gmra.mxu0 %vm248_vm1, %v1105_v42 }
 0x675   :  { %v849_v49 = vpop.f32.mrf.mxu0 }
 0x676   :  { %v852_v50 = vadd.f32 %v849_v49, %v554_v47 }
 0x678   :  { %1106 = vtanh.f32 %v852_v50 }
 0x67b   :  { %v828_v12 = vpop.f32.mrf.mxu3 }
 0x67c   :  { %v831_v9 = vadd.f32 %v828_v12, %v780_v48 }
 0x67e   :  { %v1107_v51 = vpop.eup %1106 }
 0x67f   :  { %1063 = vmatmul.msk.f32.vlgmr.msra.gmra.mxu1 %vm248_vm1, %v1107_v51  ;;  %1064 = vmatmul.msk.f32.vlgmr.msra.gmra.mxu2 %vm248_vm1, %v1107_v51 }
 0x6fc   :  { %v879_v15 = vpop.f32.mrf.mxu1 }
 0x6fd   :  { %v882_v17 = vadd.f32 %v879_v15, %v831_v9 }
 0x702   :  { %v900_v58 = vpop.f32.mrf.mxu2 }
 0x703   :  { %v903_v59 = vadd.f32 %v900_v58, %v574_v57 }
 0x705   :  { %1108 = vtanh.f32 %v903_v59 }
 0x70b   :  { %v1109_v60 = vpop.eup %1108 }
 0x70c   :  { %1069 = vmatmul.msk.f32.vlgmr.msra.gmra.mxu3 %vm248_vm1, %v1109_v60  ;;  %1070 = vmatmul.msk.f32.vlgmr.msrb.gmra.mxu0 %vm248_vm1, %v1109_v60 }
 0x789   :  { %v951_v2 = vpop.f32.mrf.mxu0 }
 0x78a   :  { %v954_v3 = vadd.f32 %v951_v2, %v597_v1 }
 0x78c   :  { %1110 = vtanh.f32 %v954_v3 }
 0x78f   :  { %v930_v16 = vpop.f32.mrf.mxu3 }
 0x790   :  { %v933_v18 = vadd.f32 %v930_v16, %v882_v17 }
 0x792   :  { %v1111_v4 = vpop.eup %1110 }
 0x793   :  { %1075 = vmatmul.msk.f32.vlgmr.msrb.gmra.mxu1 %vm248_vm1, %v1111_v4 }
 0x810   :  { %v981_v19 = vpop.f32.mrf.mxu1 }
 0x811   :  { %v984_v20 = vadd.f32 %v981_v19, %v933_v18 }
 0x813   :  { %986 = vst.msk [vmem:[#allocation2] sm:$0x3] %vm985_vm2, %v984_v20 }
 0x814   :  { %997 = dma.vmem_to_hbm [thread:$0]  %s993_s1, 32, %s995_s17, [#allocation3]  }
 0x815   :  { %1136 = dma.done.wait [#allocation3], 32  }
 0x816   :  { %1137 = vsyncadd [#allocation3], 4294967264 }
 0x817   :  { %1002 = vsyncpa [#allocation3], 1 }

</bundles_post_ra>
